<compile_context>
chip_gen: v7x
topology: tpu7x:2x2x1
jax: 0.10.0
libtpu: 0.0.40
codegen_flags: <defaults>
</compile_context>

<pallas_src>
import math

import jax
import jax.numpy as jnp
from jax.experimental import pallas as pl
from jax.experimental.pallas import tpu as pltpu

LANE = 128


def _round_up(x, m):
    return (x + m - 1) // m * m


def _vmem_limit_bytes():
    # ~3/4 of physical VMEM, capped at 100 MiB: ~48 MiB on v7x (64 MiB phys),
    # ~96 MiB on v5e/v6e (128 MiB phys).
    try:
        cap = pltpu.get_tpu_info().vmem_capacity_bytes
    except Exception:
        cap = 64 * 1024 * 1024
    return int(min(cap * 3 // 4, 100 * 1024 * 1024))


_VMEM_LIMIT = _vmem_limit_bytes()


def _choose_tile(dim, target):
    """Pick a 128-granular tile (prefer large / 256-granular for the 256-wide
    MXUs on v6e/v7x).  The caller pads `dim` up to a multiple of the result,
    so the tile always divides."""
    d128 = _round_up(dim, LANE)
    if d128 <= target:
        return d128  # one tile spans the whole (128-aligned) dim
    limit = d128 + max(d128 // 8, LANE)  # tolerate ~12.5% padding waste
    for t in range(target, LANE - 1, -LANE):
        if _round_up(dim, t) <= limit:
            return t
    return LANE


# --------------------------- kernels -----------------------------------------

def _mm_acc_kernel(a_ref, b_ref, o_ref):
    """Tiled A @ B accumulated directly into the f32, k-resident output."""
    @pl.when(pl.program_id(2) == 0)
    def _():
        o_ref[...] = jnp.zeros_like(o_ref)

    o_ref[...] += jnp.dot(a_ref[...], b_ref[...],
                          preferred_element_type=jnp.float32)


def _mm_acc_bias_kernel(a_ref, b_ref, bias_ref, o_ref):
    """Tiled A @ B + bias; bias added once, in the k==last finalize branch."""
    @pl.when(pl.program_id(2) == 0)
    def _():
        o_ref[...] = jnp.zeros_like(o_ref)

    o_ref[...] += jnp.dot(a_ref[...], b_ref[...],
                          preferred_element_type=jnp.float32)

    @pl.when(pl.program_id(2) == pl.num_programs(2) - 1)
    def _():
        o_ref[...] += bias_ref[...]


def _small_w_kernel(x_ref, w_ref, o_ref):
    """support = X @ W with the whole W resident in VMEM (1-D grid over rows)."""
    o_ref[...] = jnp.dot(x_ref[...], w_ref[...],
                         preferred_element_type=jnp.float32).astype(o_ref.dtype)


# --------------------------- matmul wrappers ----------------------------------

def _tiled_matmul(a, b, bias=None, *, tm, tn, tk):
    """A @ B (+ bias row-vector), f32 output; all dims already tile-aligned."""
    M, K = a.shape
    K2, N = b.shape
    assert K == K2 and M % tm == 0 and N % tn == 0 and K % tk == 0

    # Keep at least one parallel grid axis >= 2 when possible (v7x: 2 TCs).
    while (M // tm == 1 and N // tn == 1 and tm >= 2 * LANE
           and (tm // 2) % LANE == 0):
        tm //= 2

    grid = (M // tm, N // tn, K // tk)

    in_specs = [
        pl.BlockSpec((tm, tk), lambda i, j, k: (i, k)),
        pl.BlockSpec((tk, tn), lambda i, j, k: (k, j)),
    ]
    args = [a, b]
    bytes_accessed = (M * K * a.dtype.itemsize + K * N * b.dtype.itemsize
                      + M * N * 4)
    if bias is not None:
        in_specs.append(pl.BlockSpec((1, tn), lambda i, j, k: (0, j)))
        args.append(bias)
        bytes_accessed += N * 4
        kernel = _mm_acc_bias_kernel
    else:
        kernel = _mm_acc_kernel

    return pl.pallas_call(
        kernel,
        out_shape=jax.ShapeDtypeStruct((M, N), jnp.float32),
        grid_spec=pltpu.PrefetchScalarGridSpec(
            num_scalar_prefetch=0,
            grid=grid,
            in_specs=in_specs,
            out_specs=pl.BlockSpec((tm, tn), lambda i, j, k: (i, j)),
        ),
        compiler_params=pltpu.CompilerParams(
            dimension_semantics=("parallel", "parallel", "arbitrary"),
            vmem_limit_bytes=_VMEM_LIMIT,
        ),
        cost_estimate=pl.CostEstimate(flops=2 * M * N * K, transcendentals=0,
                                      bytes_accessed=int(bytes_accessed)),
    )(*args)


def _small_w_matmul(x, w, out_dtype, *, tm):
    """X @ W with whole W in VMEM; no reduction grid, no accumulator scratch."""
    M, K = x.shape
    K2, N = w.shape
    assert K == K2 and M % tm == 0

    bytes_accessed = (M * K * x.dtype.itemsize + K * N * w.dtype.itemsize
                      + M * N * jnp.dtype(out_dtype).itemsize)
    return pl.pallas_call(
        _small_w_kernel,
        out_shape=jax.ShapeDtypeStruct((M, N), out_dtype),
        grid_spec=pltpu.PrefetchScalarGridSpec(
            num_scalar_prefetch=0,
            grid=(M // tm,),
            in_specs=[pl.BlockSpec((tm, K), lambda i: (i, 0)),
                      pl.BlockSpec((K, N), lambda i: (0, 0))],
            out_specs=pl.BlockSpec((tm, N), lambda i: (i, 0)),
        ),
        compiler_params=pltpu.CompilerParams(
            dimension_semantics=("parallel",),
            vmem_limit_bytes=_VMEM_LIMIT,
        ),
        cost_estimate=pl.CostEstimate(flops=2 * M * N * K, transcendentals=0,
                                      bytes_accessed=int(bytes_accessed)),
    )(x, w)


# --------------------------- public forward -----------------------------------

def graph_convolution(x, adj, weight, bias=None, *, use_bf16=True,
                      small_w_limit_bytes=4 * 1024 * 1024):
    """Pallas TPU implementation of GraphConvolution.forward.

    x:      (N, in_features) float32
    adj:    (N, N)           float32
    weight: (in_features, out_features) float32
    bias:   (out_features,) float32 or None
    use_bf16: feed the MXU bf16 inputs (f32 accumulation).  Exact-f32 math
              with use_bf16=False.
    returns (N, out_features) float32
    """
    n, in_f = x.shape
    out_f = weight.shape[1]

    in_dtype = jnp.bfloat16 if use_bf16 else jnp.float32
    in_bytes = 2 if use_bf16 else 4

    # Choose tiles first; pad dims to multiples of the chosen tiles.
    t_n = _choose_tile(n, 512)        # node dim (adj rows AND adj@support reduction)
    t_out = _choose_tile(out_f, 512)  # output-feature dim
    t_in = _choose_tile(in_f, 512)    # input-feature dim (X@W reduction)

    n_p = _round_up(n, t_n)
    out_p = _round_up(out_f, t_out)
    in_p = _round_up(in_f, t_in)

    def pad_cast(arr, shape, dtype):
        arr = arr.astype(dtype)
        pads = tuple((0, p - s) for s, p in zip(arr.shape, shape))
        if any(hi for _, hi in pads):
            arr = jnp.pad(arr, pads)   # skipped when already aligned
        return arr

    x_p = pad_cast(x, (n_p, in_p), in_dtype)
    w_p = pad_cast(weight, (in_p, out_p), in_dtype)
    adj_p = pad_cast(adj, (n_p, n_p), in_dtype)
    bias_p = None
    if bias is not None:
        bias_p = pad_cast(bias.reshape(1, -1), (1, out_p), jnp.float32)

    # ---- support = X @ W (materialized once) ---------------------------------
    if in_p * out_p * in_bytes <= small_w_limit_bytes:
        # Whole W resident in VMEM; write support directly in the MXU dtype.
        support = _small_w_matmul(x_p, w_p, in_dtype, tm=t_n)
    else:
        support = _tiled_matmul(x_p, w_p, tm=t_n, tn=t_out, tk=t_in)
        if use_bf16:
            support = support.astype(jnp.bfloat16)

    # ---- output = adj @ support (+ bias in finalize branch) ------------------
    out = _tiled_matmul(adj_p, support, bias_p, tm=t_n, tn=t_out, tk=t_n)

    return out[:n, :out_f]


def init_params(key, in_features, out_features, bias=True):
    """Matches reset_parameters(): uniform(-stdv, stdv), stdv = 1/sqrt(out_f)."""
    stdv = 1.0 / math.sqrt(out_features)
    kw, kb = jax.random.split(key)
    weight = jax.random.uniform(kw, (in_features, out_features),
                                dtype=jnp.float32, minval=-stdv, maxval=stdv)
    b = (jax.random.uniform(kb, (out_features,), dtype=jnp.float32,
                            minval=-stdv, maxval=stdv) if bias else None)
    return weight, b


def _check(out, ref, rel_tol):
    err = float(jnp.max(jnp.abs(out - ref)))
    tol = rel_tol * float(jnp.max(jnp.abs(ref))) + 1e-5
    assert err <= tol, f"mismatch: max err {err} > tol {tol}"


if __name__ == "__main__":
    key = jax.random.PRNGKey(0)

    # Small synthetic problem: 16 nodes, 8 input features, 32 output features.
    N, IN_F, OUT_F = 16, 8, 32
    k_x, k_adj, k_params = jax.random.split(key, 3)
    x = jax.random.normal(k_x, (N, IN_F), dtype=jnp.float32)
    a = jax.random.uniform(k_adj, (N, N), dtype=jnp.float32)
    adj = (a + a.T) * 0.5
    weight, bias = init_params(k_params, IN_F, OUT_F, bias=True)

    ref = adj @ (x @ weight) + bias

    # Default path: bf16 MXU inputs, f32 accumulation (relaxed tolerance).
    out = jax.block_until_ready(graph_convolution(x, adj, weight, bias))
    assert out.shape == (N, OUT_F) and out.dtype == jnp.float32
    _check(out, ref, 2e-2)

    # Exact f32 path.
    out_f32 = jax.block_until_ready(
        graph_convolution(x, adj, weight, bias, use_bf16=False))
    assert jnp.allclose(out_f32, ref, atol=1e-5, rtol=1e-5), "f32 mismatch"

    # No-bias path.
    out_nb = jax.block_until_ready(
        graph_convolution(x, adj, weight, None, use_bf16=False))
    assert jnp.allclose(out_nb, adj @ (x @ weight), atol=1e-5, rtol=1e-5)

    # Force the tiled (reduction-grid) path for support = X @ W as well.
    out_tiled = jax.block_until_ready(
        graph_convolution(x, adj, weight, bias, use_bf16=False,
                          small_w_limit_bytes=0))
    assert jnp.allclose(out_tiled, ref, atol=1e-5, rtol=1e-5)

    # Ragged (non-128-multiple) shapes exercise the padding paths.
    N2, IN2, OUT2 = 200, 48, 96
    k_x2, k_adj2, k_p2 = jax.random.split(jax.random.PRNGKey(1), 3)
    x2 = jax.random.normal(k_x2, (N2, IN2), dtype=jnp.float32)
    a2 = jax.random.uniform(k_adj2, (N2, N2), dtype=jnp.float32)
    adj2 = (a2 + a2.T) * 0.5
    w2, b2 = init_params(k_p2, IN2, OUT2, bias=True)
    ref2 = adj2 @ (x2 @ w2) + b2

    out2_bf16 = jax.block_until_ready(graph_convolution(x2, adj2, w2, b2))
    _check(out2_bf16, ref2, 2e-2)
    out2_f32 = jax.block_until_ready(
        graph_convolution(x2, adj2, w2, b2, use_bf16=False))
    assert jnp.allclose(out2_f32, ref2, atol=1e-4, rtol=1e-4)

    print("KERNEL_OK")
</pallas_src>

<mosaic_0001>
module attributes {stable_mosaic.version = 11 : i64} {
  func.func @_small_w_kernel(%arg0: i32, %arg1: memref<128x128xbf16, #tpu.memory_space<vmem>>, %arg2: memref<128x128xbf16, #tpu.memory_space<vmem>>, %arg3: memref<128x128xbf16, #tpu.memory_space<vmem>>) attributes {dimension_semantics = [#tpu.dimension_semantics<parallel>], iteration_bounds = array<i64: 1>, scalar_prefetch = 0 : i64, scratch_operands = 0 : i64, tpu.core_type = #tpu.core_type<tc>, window_params = [{transform_indices = @transform_0, window_bounds = array<i64: 128, 128>}, {pipeline_mode = #tpu.pipeline_mode<synchronous>, transform_indices = @transform_1, window_bounds = array<i64: 128, 128>}, {transform_indices = @transform_2, window_bounds = array<i64: 128, 128>}]} {
    %c0 = arith.constant 0 : index
    %c0_0 = arith.constant 0 : index
    %0 = vector.load %arg1[%c0, %c0_0] : memref<128x128xbf16, #tpu.memory_space<vmem>>, vector<128x128xbf16>
    %c0_1 = arith.constant 0 : index
    %c0_2 = arith.constant 0 : index
    %1 = vector.load %arg2[%c0_1, %c0_2] : memref<128x128xbf16, #tpu.memory_space<vmem>>, vector<128x128xbf16>
    %cst = arith.constant dense<0.000000e+00> : vector<128x128xf32>
    %2 = tpu.matmul %0, %1, %cst {dimension_numbers = #tpu.dot_dimension_numbers<[1], [0], [0], [1], [0, 0, 1, 1], [], []>} : vector<128x128xbf16>, vector<128x128xbf16>, vector<128x128xf32> -> vector<128x128xf32>
    %3 = arith.truncf %2 : vector<128x128xf32> to vector<128x128xbf16>
    %c0_3 = arith.constant 0 : index
    %c0_4 = arith.constant 0 : index
    %4 = vector.load %arg3[%c0_3, %c0_4] : memref<128x128xbf16, #tpu.memory_space<vmem>>, vector<128x128xbf16>
    tpu.vector_store %arg3[%c0_3, %c0_4], %3 {strides = array<i32>} : memref<128x128xbf16, #tpu.memory_space<vmem>>, vector<128x128xbf16>,
    return
  }
  func.func @transform_0(%arg0: i32) -> (i32, i32) {
    %c0_i32 = arith.constant 0 : i32
    %c0_i32_0 = arith.constant 0 : i32
    return %arg0, %c0_i32 : i32, i32
  }
  func.func @transform_1(%arg0: i32) -> (i32, i32) {
    %c0_i32 = arith.constant 0 : i32
    %c0_i32_0 = arith.constant 0 : i32
    %c0_i32_1 = arith.constant 0 : i32
    return %c0_i32, %c0_i32_0 : i32, i32
  }
  func.func @transform_2(%arg0: i32) -> (i32, i32) {
    %c0_i32 = arith.constant 0 : i32
    %c0_i32_0 = arith.constant 0 : i32
    return %arg0, %c0_i32 : i32, i32
  }
}

</mosaic_0001>

<bundles_post_ra>
// kernel: tpu_custom_call.1
= control target key start
LH: loop header
LB: loop body
LE: loop exit
PB: predicated region body
PF: predicated region fallthrough
CT: control target
= control target key end

     0   :  { %7 = vsyncpa [#allocation3], 0  ;;  %s681_s0 = inlined_call_operand.hbm [shape: bf16[128,128], index: 0, kind: input, shape index: {}]   ;;  %s682_s1 = inlined_call_operand.hbm [shape: bf16[128,128], index: 1, kind: input, shape index: {}]   ;;  %s683_s2 = inlined_call_operand.hbm [shape: bf16[128,128], index: 2, kind: output, shape index: {}]  }
   0x1   :  { %8 = vsyncpa [#allocation6], 0 }
   0x2   :  { %9 = vsyncpa [#allocation4], 0  ;;  %s616_s9 = smov [#allocation2]   ;;  %s544_s13 = scalar_lea.hbm %s681_s0, 1024 }
   0x3   :  { %s15_s10 = sshll.u32 %s616_s9, 4  ;;  %p545_p0 = scmp.ne.s32.totalorder %s681_s0, %s544_s13  ;;  %s16_s10 = int_to_ptr.vmem [resolvable:$true] %s15_s10 }
   0x4   :  { %p548_p1 = scmp.lt.u32.totalorder %s544_s13, %s681_s0 }
   0x6   :  { %p550_p2 = pnand %p548_p1, %p545_p0 }
   0x8   :  { %553 = shalt.err (!%p550_p2)
}
   0x9   :  { %s554_s18 = scalar_lea.vmem %s16_s10, 1024  ;;  %p559_p4 = scmp.lt.s32.totalorder %s16_s10, %s16_s10 }
   0xa   :  { %p555_p3 = scmp.ne.s32.totalorder %s16_s10, %s554_s18  ;;  %p560_p5 = scmp.lt.s32.totalorder %s554_s18, %s554_s18 }
   0xc   :  { %p561_p6 = por %p560_p5, %p559_p4 }
   0xe   :  { %p562_p7 = pnand %p561_p6, %p555_p3 }
  0x10   :  { %565 = shalt.err (!%p562_p7)
}
  0x11   :  { %s617_s19 = smov 64   ;;  %s618_s20 = smov 4  }
  0x12   :  { %21 = dma.hbm_to_vmem [thread:$0]  %s681_s0, 1024, %s16_s10, [#allocation3], %s617_s19, %s617_s19, %s618_s20  }
  0x13   :  { %s619_s23 = smov [#allocation5]   ;;  %s566_s27 = scalar_lea.hbm %s682_s1, 1024 }
  0x14   :  { %s27_s24 = sshll.u32 %s619_s23, 4  ;;  %p567_p8 = scmp.ne.s32.totalorder %s682_s1, %s566_s27  ;;  %s28_s24 = int_to_ptr.vmem [resolvable:$true] %s27_s24 }
  0x15   :  { %p570_p9 = scmp.lt.u32.totalorder %s566_s27, %s682_s1 }
  0x17   :  { %p572_p10 = pnand %p570_p9, %p567_p8 }
  0x19   :  { %575 = shalt.err (!%p572_p10)
}
  0x1a   :  { %s576_s4 = scalar_lea.vmem %s28_s24, 1024  ;;  %p581_p12 = scmp.lt.s32.totalorder %s28_s24, %s28_s24 }
  0x1b   :  { %p577_p11 = scmp.ne.s32.totalorder %s28_s24, %s576_s4  ;;  %p582_p13 = scmp.lt.s32.totalorder %s576_s4, %s576_s4 }
  0x1d   :  { %p583_p0 = por %p582_p13, %p581_p12 }
  0x1f   :  { %p584_p1 = pnand %p583_p0, %p577_p11 }
  0x21   :  { %587 = shalt.err (!%p584_p1)
}
  0x22   :  { %33 = dma.hbm_to_vmem [thread:$0]  %s682_s1, 1024, %s28_s24, [#allocation6], %s617_s19, %s617_s19, %s618_s20  }
  0x23   :  { %610 = dma.done.wait [#allocation3], 1024  }
  0x24   :  { %611 = vsyncadd [#allocation3], 4294966272 }
  0x25   :  { %612 = dma.done.wait [#allocation6], 1024  }
  0x26   :  { %613 = vsyncadd [#allocation6], 4294966272  ;;  %v528_v0 = vld [vmem:[#allocation5] sm:$0xff]   ;;  %v529_v1 = vld [vmem:[#allocation5 + $0x8] sm:$0xff]   ;;  %s620_s1 = smov [#allocation7]  }
  0x27   :  { %475 = vmatprep.subr.bf16.mxu0 %v528_v0  ;;  %507 = vmatprep.subr.bf16.mxu1 %v528_v0  ;;  %v530_v2 = vld [vmem:[#allocation5 + $0x10] sm:$0xff]   ;;  %v531_v3 = vld [vmem:[#allocation5 + $0x18] sm:$0xff]   ;;  %v536_v4 = vld [vmem:[#allocation2] sm:$0xff]   ;;  %s351_s6 = sshll.u32 %s620_s1, 4  ;;  %s352_s6 = int_to_ptr.vmem [resolvable:$true] %s351_s6 }
  0x28   :  { %476 = vmatpush3.bf16.msra.mxu0 %v528_v0  ;;  %515 = vmatpush3.bf16.msra.mxu1 %v528_v0  ;;  %v537_v5 = vld [vmem:[#allocation2 + $0x20] sm:$0xff]   ;;  %v533_v7 = vld [vmem:[#allocation5 + $0x28] sm:$0xff]   ;;  %v534_v8 = vld [vmem:[#allocation5 + $0x30] sm:$0xff]   ;;  %s588_s7 = scalar_lea.vmem %s352_s6, 1024  ;;  %p593_p3 = scmp.lt.s32.totalorder %s352_s6, %s352_s6 }
  0x29   :  { %477 = vmatprep.subr.bf16.mxu0 %v529_v1  ;;  %508 = vmatprep.subr.bf16.mxu1 %v529_v1  ;;  %v532_v6 = vld [vmem:[#allocation5 + $0x20] sm:$0xff]   ;;  %v535_v9 = vld [vmem:[#allocation5 + $0x38] sm:$0xff]   ;;  %v538_v10 = vld [vmem:[#allocation2 + $0x8] sm:$0xff]   ;;  %p589_p2 = scmp.ne.s32.totalorder %s352_s6, %s588_s7  ;;  %p594_p4 = scmp.lt.s32.totalorder %s588_s7, %s588_s7 }
  0x2a   :  { %491 = vmatprep.mubr.bf16.mxu0 %v536_v4  ;;  %499 = vmatprep.mubr.bf16.mxu1 %v537_v5  ;;  %v539_v11 = vld [vmem:[#allocation2 + $0x28] sm:$0xff]   ;;  %v540_v12 = vld [vmem:[#allocation2 + $0x10] sm:$0xff]   ;;  %v542_v14 = vld [vmem:[#allocation2 + $0x18] sm:$0xff]  }
  0x2b   :  { %v541_v13 = vld [vmem:[#allocation2 + $0x30] sm:$0xff]   ;;  %v543_v15 = vld [vmem:[#allocation2 + $0x38] sm:$0xff]   ;;  %p595_p5 = por %p594_p4, %p593_p3 }
  0x2c   :  { %478 = vmatpush3.bf16.msra.mxu0 %v529_v1  ;;  %516 = vmatpush3.bf16.msra.mxu1 %v529_v1 }
  0x2d   :  { %479 = vmatprep.subr.bf16.mxu0 %v530_v2  ;;  %509 = vmatprep.subr.bf16.mxu1 %v530_v2  ;;  %p596_p6 = pnand %p595_p5, %p589_p2 }
  0x30   :  { %480 = vmatpush3.bf16.msra.mxu0 %v530_v2  ;;  %517 = vmatpush3.bf16.msra.mxu1 %v530_v2 }
  0x31   :  { %481 = vmatprep.subr.bf16.mxu0 %v531_v3  ;;  %510 = vmatprep.subr.bf16.mxu1 %v531_v3 }
  0x34   :  { %482 = vmatpush3.bf16.msra.mxu0 %v531_v3  ;;  %518 = vmatpush3.bf16.msra.mxu1 %v531_v3 }
  0x35   :  { %483 = vmatprep.subr.bf16.mxu0 %v532_v6  ;;  %511 = vmatprep.subr.bf16.mxu1 %v532_v6 }
  0x38   :  { %484 = vmatpush3.bf16.msra.mxu0 %v532_v6  ;;  %519 = vmatpush3.bf16.msra.mxu1 %v532_v6 }
  0x39   :  { %485 = vmatprep.subr.bf16.mxu0 %v533_v7  ;;  %512 = vmatprep.subr.bf16.mxu1 %v533_v7 }
  0x3c   :  { %486 = vmatpush3.bf16.msra.mxu0 %v533_v7  ;;  %520 = vmatpush3.bf16.msra.mxu1 %v533_v7 }
  0x3d   :  { %487 = vmatprep.subr.bf16.mxu0 %v534_v8  ;;  %513 = vmatprep.subr.bf16.mxu1 %v534_v8 }
  0x40   :  { %488 = vmatpush3.bf16.msra.mxu0 %v534_v8  ;;  %521 = vmatpush3.bf16.msra.mxu1 %v534_v8 }
  0x41   :  { %489 = vmatprep.subr.bf16.mxu0 %v535_v9  ;;  %514 = vmatprep.subr.bf16.mxu1 %v535_v9 }
  0x44   :  { %490 = vmatpush3.bf16.msra.mxu0 %v535_v9  ;;  %522 = vmatpush3.bf16.msra.mxu1 %v535_v9 }
  0x47   :  { %492 = vmatmul.mubr.bf16.vlgmr.msra.gmra.mrb[0].mxu0 %v538_v10  ;;  %500 = vmatmul.mubr.bf16.vlgmr.msra.gmra.mrb[0].mxu1 %v539_v11 }
  0x48   :  { %495 = vmatprep.mubr.bf16.mxu0 %v540_v12  ;;  %503 = vmatprep.mubr.bf16.mxu1 %v541_v13 }
  0x4f   :  { %496 = vmatmul.mubr.bf16.gmra.mrb[4].mxu0 %v542_v14  ;;  %504 = vmatmul.mubr.bf16.gmra.mrb[4].mxu1 %v543_v15 }
 0x11a   :  { %v493_v16 = vpop.f32.mrb[0].mxu0  ;;  %v501_v17 = vpop.f32.mrb[0].mxu1 }
 0x11b   :  { %v203_v18 = vpop.f32.mrb[1].mxu0  ;;  %v235_v19 = vpop.f32.mrb[1].mxu1 }
 0x11c   :  { %v494_v20 = vpop.f32.mrb[2].mxu0  ;;  %v502_v21 = vpop.f32.mrb[2].mxu1 }
 0x11d   :  { %v420_v22 = vpack.c.bf16 %v494_v20, %v493_v16  ;;  %v440_v23 = vpack.c.bf16 %v502_v21, %v501_v17  ;;  %v206_v24 = vpop.f32.mrb[3].mxu0  ;;  %v238_v25 = vpop.f32.mrb[3].mxu1 }
 0x11e   :  { %v415_v26 = vpack.c.bf16 %v206_v24, %v203_v18  ;;  %v435_v27 = vpack.c.bf16 %v238_v25, %v235_v19 }
 0x11f   :  { %452 = vst [vmem:[#allocation7 + $0x8] sm:$0xff] %v420_v22   ;;  %456 = vst [vmem:[#allocation7 + $0x28] sm:$0xff] %v440_v23  }
 0x120   :  { %416 = vst [vmem:[#allocation7] sm:$0xff] %v415_v26   ;;  %455 = vst [vmem:[#allocation7 + $0x20] sm:$0xff] %v435_v27  }
 0x122   :  { %v497_v28 = vpop.f32.mrb[4].mxu0  ;;  %v505_v29 = vpop.f32.mrb[4].mxu1 }
 0x123   :  { %v219_v30 = vpop.f32.mrb[5].mxu0  ;;  %v251_v31 = vpop.f32.mrb[5].mxu1 }
 0x124   :  { %v498_v32 = vpop.f32.mrb[6].mxu0  ;;  %v506_v33 = vpop.f32.mrb[6].mxu1 }
 0x125   :  { %v430_v34 = vpack.c.bf16 %v498_v32, %v497_v28  ;;  %v450_v35 = vpack.c.bf16 %v506_v33, %v505_v29  ;;  %v222_v36 = vpop.f32.mrb[7].mxu0  ;;  %v254_v37 = vpop.f32.mrb[7].mxu1 }
 0x126   :  { %v425_v38 = vpack.c.bf16 %v222_v36, %v219_v30  ;;  %v445_v39 = vpack.c.bf16 %v254_v37, %v251_v31 }
 0x127   :  { %454 = vst [vmem:[#allocation7 + $0x18] sm:$0xff] %v430_v34   ;;  %458 = vst [vmem:[#allocation7 + $0x38] sm:$0xff] %v450_v35  }
 0x128   :  { %453 = vst [vmem:[#allocation7 + $0x10] sm:$0xff] %v425_v38   ;;  %457 = vst [vmem:[#allocation7 + $0x30] sm:$0xff] %v445_v39  }
 0x129   :  { %599 = shalt.err (!%p596_p6)
}
 0x12a   :  { %s600_s10 = scalar_lea.hbm %s683_s2, 1024 }
 0x12b   :  { %p601_p7 = scmp.ne.s32.totalorder %s683_s2, %s600_s10  ;;  %p604_p8 = scmp.lt.u32.totalorder %s600_s10, %s683_s2 }
 0x12d   :  { %p606_p9 = pnand %p604_p8, %p601_p7 }
 0x12f   :  { %609 = shalt.err (!%p606_p9)
}
 0x130   :  { %357 = dma.vmem_to_hbm [thread:$0]  %s352_s6, 1024, %s683_s2, [#allocation4], %s617_s19, %s617_s19, %s618_s20  }
 0x131   :  { %614 = dma.done.wait [#allocation4], 1024  }
 0x132   :  { %615 = vsyncadd [#allocation4], 4294966272 }
 0x133   :  { %361 = vsyncpa [#allocation3], 1 }
 0x134   :  { %362 = vsyncpa [#allocation6], 1 }
 0x135   :  { %363 = vsyncpa [#allocation4], 1 }

</bundles_post_ra>
